<compile_context>
chip_gen: v7x
topology: tpu7x:2x2x1
jax: 0.10.0
libtpu: 0.0.40
codegen_flags: <defaults>
</compile_context>

<pallas_src>
import jax
import jax.numpy as jnp
import numpy as np
from jax.experimental import pallas as pl
from jax.experimental.pallas import tpu as pltpu


def _round_up(x, m):
    return (x + m - 1) // m * m


def fused_embed_kernel(p_ref, w_ref, add_ref, out_ref):
    # (1, TS, Kp) bf16 @ (Kp, Dp) bf16 -> f32 accumulate, + (TS, Dp) f32 additive.
    out_ref[0] = (
        jnp.dot(p_ref[0], w_ref[...], preferred_element_type=jnp.float32)
        + add_ref[...]
    )


def _extract_patches(x, patch):
    # x: (B, C, H, W) -> (B, N, C*patch*patch), per-patch vector in (c, kh, kw)
    # order (matches torch conv weight.reshape(D, -1)).
    B, C, H, W = x.shape
    nh, nw = H // patch, W // patch
    x = x.reshape(B, C, nh, patch, nw, patch)
    x = x.transpose(0, 2, 4, 1, 3, 5)                 # (B, nh, nw, C, p, p)
    return x.reshape(B, nh * nw, C * patch * patch)


def dual_frame_embeddings(x, params, patch, *, tile_s=512):
    """Two-frame path of DualFrameEmbeddings.forward (two_frame=True)."""
    B, C2, H, W = x.shape
    D = params["wa"].shape[1]
    w0, w1, fb = params["w0"], params["w1"], params["fb"]

    # ---- fold the 1x1 fusion conv into the GEMM weight / additive term (f32) ----
    w_fused = jnp.concatenate([w0 * params["wa"], w1 * params["wb"]], axis=0)  # (2K, D)
    add_a = jnp.concatenate(
        [params["cls_a"] + params["pos_a"][0:1],
         params["ba"][None, :] + params["pos_a"][1:]], axis=0)                 # (S, D)
    add_b = jnp.concatenate(
        [params["cls_b"] + params["pos_b"][0:1],
         params["bb"][None, :] + params["pos_b"][1:]], axis=0)
    add_fused = w0 * add_a + w1 * add_b + fb                                   # (S, D) f32

    # ---- single bf16 patchification of the full 2C-channel input (both frames) ----
    p = _extract_patches(x.astype(jnp.bfloat16), patch)   # (B, N, 2K), cols=[frame1|frame2]
    _, N, K2 = p.shape
    S = N + 1

    Kp = _round_up(K2, 128)
    Dp = _round_up(D, 128)
    ts = min(tile_s, _round_up(S, 16))                 # 16-aligned seq tile (bf16 sublanes)
    Sp = _round_up(S, ts)

    # One write into a zero buffer: CLS row (seq index 0) and all K/S padding stay
    # zero, so they contribute 0 through the matmul and the padded output rows are
    # well-defined before slicing.
    p_full = jnp.zeros((B, Sp, Kp), jnp.bfloat16)
    p_full = jax.lax.dynamic_update_slice(p_full, p, (0, 1, 0))

    w = jnp.pad(w_fused, ((0, Kp - K2), (0, Dp - D))).astype(jnp.bfloat16)     # (Kp, Dp)
    add = jnp.pad(add_fused, ((0, Sp - S), (0, Dp - D)))                       # (Sp, Dp) f32

    out = pl.pallas_call(
        fused_embed_kernel,
        out_shape=jax.ShapeDtypeStruct((B, Sp, Dp), jnp.float32),
        grid=(B, Sp // ts),
        in_specs=[
            pl.BlockSpec((1, ts, Kp), lambda b, s: (b, s, 0)),   # bf16 patch rows
            pl.BlockSpec((Kp, Dp), lambda b, s: (0, 0)),         # bf16 folded weight (invariant)
            pl.BlockSpec((ts, Dp), lambda b, s: (s, 0)),         # f32 additive term, no batch tile
        ],
        out_specs=pl.BlockSpec((1, ts, Dp), lambda b, s: (b, s, 0)),
        compiler_params=pltpu.CompilerParams(
            dimension_semantics=("parallel", "parallel"),
            vmem_limit_bytes=48 * 1024 * 1024),
    )(p_full, w, add)

    # drop the alignment padding
    return out[:, :S, :D]


def reference(x, params, patch):
    """Pure-JAX f32 replica of the PyTorch forward (for verification)."""
    B, C2, H, W = x.shape
    C = C2 // 2

    def embed(xf, w, b, cls, pos):
        p = _extract_patches(xf, patch)                            # (B, N, K)
        e = p @ w + b                                              # conv as matmul
        e = jnp.concatenate([jnp.broadcast_to(cls, (B, 1, w.shape[1])), e], axis=1)
        return e + pos[None]                                       # (B, S, D)

    e1 = embed(x[:, :C], params["wa"], params["ba"], params["cls_a"], params["pos_a"])
    e2 = embed(x[:, C:], params["wb"], params["bb"], params["cls_b"], params["pos_b"])
    # stack on dim=1 + Conv2d(2,1,1) + squeeze(1)
    return params["w0"] * e1 + params["w1"] * e2 + params["fb"]


def make_params(key, C, D, patch, S):
    ks = jax.random.split(key, 6)
    # embeddings_a (ViT patch-embedding module)
    w_torch = jax.random.normal(ks[0], (D, C, patch, patch), jnp.float32) * 0.02
    wa = w_torch.reshape(D, -1).T                                  # (K, D)
    ba = jax.random.normal(ks[1], (D,), jnp.float32) * 0.02
    cls_a = jax.random.normal(ks[2], (1, D), jnp.float32) * 0.02
    pos_a = jax.random.normal(ks[3], (S, D), jnp.float32) * 0.02
    # embeddings_b = copy.deepcopy(embeddings_a)  -> identical initial values
    wb, bb, cls_b, pos_b = wa, ba, cls_a, pos_a
    # fusion_conv = Conv2d(2, 1, kernel_size=1): weight (1,2,1,1), bias (1,)
    fw = jax.random.normal(ks[4], (2,), jnp.float32) * 0.5
    fb = jax.random.normal(ks[5], (), jnp.float32) * 0.1
    return dict(wa=wa, ba=ba, cls_a=cls_a, pos_a=pos_a,
                wb=wb, bb=bb, cls_b=cls_b, pos_b=pos_b,
                w0=float(fw[0]), w1=float(fw[1]), fb=float(fb))


if __name__ == "__main__":
    B, C, H, W = 2, 3, 16, 16          # per-frame channels = 3, input has 2*C channels
    patch, D = 8, 32
    N = (H // patch) * (W // patch)    # 4 patches per frame
    S = N + 1                          # + CLS token

    key = jax.random.PRNGKey(0)
    kx, kp = jax.random.split(key)
    x = jax.random.normal(kx, (B, 2 * C, H, W), jnp.float32)
    params = make_params(kp, C, D, patch, S)

    out = dual_frame_embeddings(x, params, patch)
    out = jax.block_until_ready(out)

    ref = reference(x, params, patch)
    # Tolerance covers (a) folding the fusion scalars into the GEMM weight
    # (reassociated rounding vs. the PyTorch graph) and (b) bf16 rounding of the
    # streamed operands; accumulation stays f32. Structural correctness
    # (layout, CLS row, padding, slicing) is exact.
    np.testing.assert_allclose(np.asarray(out), np.asarray(ref), atol=1e-2, rtol=1e-2)
    assert out.shape == (B, S, D)
    print("KERNEL_OK")
</pallas_src>

<mosaic_0001>
module attributes {stable_mosaic.version = 11 : i64} {
  func.func @fused_embed_kernel(%arg0: i32, %arg1: i32, %arg2: memref<1x16x384xbf16, #tpu.memory_space<vmem>>, %arg3: memref<384x128xbf16, #tpu.memory_space<vmem>>, %arg4: memref<16x128xf32, #tpu.memory_space<vmem>>, %arg5: memref<1x16x128xf32, #tpu.memory_space<vmem>>) attributes {dimension_semantics = [#tpu.dimension_semantics<parallel>, #tpu.dimension_semantics<parallel>], iteration_bounds = array<i64: 2, 1>, scalar_prefetch = 0 : i64, scratch_operands = 0 : i64, tpu.core_type = #tpu.core_type<tc>, window_params = [{transform_indices = @transform_0, window_bounds = array<i64: 1, 16, 384>}, {pipeline_mode = #tpu.pipeline_mode<synchronous>, transform_indices = @transform_1, window_bounds = array<i64: 384, 128>}, {transform_indices = @transform_2, window_bounds = array<i64: 16, 128>}, {transform_indices = @transform_3, window_bounds = array<i64: 1, 16, 128>}]} {
    %c0 = arith.constant 0 : index
    %c0_0 = arith.constant 0 : index
    %c0_1 = arith.constant 0 : index
    %0 = vector.load %arg2[%c0, %c0_0, %c0_1] : memref<1x16x384xbf16, #tpu.memory_space<vmem>>, vector<1x16x384xbf16>
    %1 = vector.shape_cast %0 : vector<1x16x384xbf16> to vector<16x384xbf16>
    %c0_2 = arith.constant 0 : index
    %c0_3 = arith.constant 0 : index
    %2 = vector.load %arg3[%c0_2, %c0_3] : memref<384x128xbf16, #tpu.memory_space<vmem>>, vector<384x128xbf16>
    %cst = arith.constant dense<0.000000e+00> : vector<16x128xf32>
    %3 = tpu.matmul %1, %2, %cst {dimension_numbers = #tpu.dot_dimension_numbers<[1], [0], [0], [1], [0, 0, 1, 1], [], []>} : vector<16x384xbf16>, vector<384x128xbf16>, vector<16x128xf32> -> vector<16x128xf32>
    %c0_4 = arith.constant 0 : index
    %c0_5 = arith.constant 0 : index
    %4 = vector.load %arg4[%c0_4, %c0_5] : memref<16x128xf32, #tpu.memory_space<vmem>>, vector<16x128xf32>
    %5 = arith.addf %3, %4 : vector<16x128xf32>
    %c0_6 = arith.constant 0 : index
    %c0_7 = arith.constant 0 : index
    %c0_8 = arith.constant 0 : index
    %6 = vector.load %arg5[%c0_6, %c0_7, %c0_8] : memref<1x16x128xf32, #tpu.memory_space<vmem>>, vector<1x16x128xf32>
    %7 = vector.shape_cast %6 : vector<1x16x128xf32> to vector<16x128xf32>
    %8 = vector.shape_cast %5 : vector<16x128xf32> to vector<1x16x128xf32>
    tpu.vector_store %arg5[%c0_6, %c0_7, %c0_8], %8 {strides = array<i32>} : memref<1x16x128xf32, #tpu.memory_space<vmem>>, vector<1x16x128xf32>,
    return
  }
  func.func @transform_0(%arg0: i32, %arg1: i32) -> (i32, i32, i32) {
    %c0_i32 = arith.constant 0 : i32
    %c0_i32_0 = arith.constant 0 : i32
    return %arg0, %arg1, %c0_i32 : i32, i32, i32
  }
  func.func @transform_1(%arg0: i32, %arg1: i32) -> (i32, i32) {
    %c0_i32 = arith.constant 0 : i32
    %c0_i32_0 = arith.constant 0 : i32
    %c0_i32_1 = arith.constant 0 : i32
    return %c0_i32, %c0_i32_0 : i32, i32
  }
  func.func @transform_2(%arg0: i32, %arg1: i32) -> (i32, i32) {
    %c0_i32 = arith.constant 0 : i32
    %c0_i32_0 = arith.constant 0 : i32
    return %arg1, %c0_i32 : i32, i32
  }
  func.func @transform_3(%arg0: i32, %arg1: i32) -> (i32, i32, i32) {
    %c0_i32 = arith.constant 0 : i32
    %c0_i32_0 = arith.constant 0 : i32
    return %arg0, %arg1, %c0_i32 : i32, i32, i32
  }
}

</mosaic_0001>

<bundles_post_ra>
// kernel: tpu_custom_call.1
= control target key start
LH: loop header
LB: loop body
LE: loop exit
PB: predicated region body
PF: predicated region fallthrough
CT: control target
= control target key end

     0   :  { %8 = vsyncpa [#allocation3], 0  ;;  %s1357_s0 = inlined_call_operand.hbm [shape: bf16[2,16,384], index: 0, kind: input, shape index: {}]   ;;  %s1358_s1 = inlined_call_operand.hbm [shape: bf16[384,128], index: 1, kind: input, shape index: {}]   ;;  %s1359_s2 = inlined_call_operand.hbm [shape: f32[16,128], index: 2, kind: input, shape index: {}]   ;;  %s1360_s3 = inlined_call_operand.hbm [shape: f32[2,16,128], index: 3, kind: output, shape index: {}]  }
   0x1   :  { %10 = vsyncpa [#allocation3 + $0x1], 0 }
   0x2   :  { %11 = vsyncpa [#allocation6], 0 }
   0x3   :  { %12 = vsyncpa [#allocation4], 0 }
   0x4   :  { %14 = vsyncpa [#allocation4 + $0x1], 0  ;;  %s1098_s12 = smov 0   ;;  %s1100_s13 = smov 0  }
   0x5   :  { %s1102_s14 = smov 0   ;;  %s1104_s15 = smov 0  }
   0x6   :  { %s1106_s16 = smov 0   ;;  %s1108_s17 = smov 0  }
   0x7 LB: > { %s671_s18 = sadd.s32 4294967295, %s1062_s17   ;;  %s672_s19 = sadd.s32 4294967294, %s1062_s17   ;;  %s1062_s17 = sphi %s1108_s17, %s20_s17   ;;  %s1058_s16 = sphi %s1106_s16, %s1382_s16   ;;  %s1054_s15 = sphi %s1104_s15, %s1381_s15   ;;  %s1050_s14 = sphi %s1102_s14, %s1380_s14   ;;  %s1046_s13 = sphi %s1100_s13, %s1379_s13   ;;  %s1042_s12 = sphi %s1098_s12, %s1378_s12  }
   0x8   : > { %p54_p0 = scmp.ne.s32.totalorder %s1046_s13, %s1042_s12  ;;  %p1132_p1 = scmp.eq.s32.totalorder %s671_s18, 0 }
   0x9   : > { %p1136_p2 = scmp.eq.s32.totalorder %s671_s18, 1  ;;  %p133_p3 = scmp.eq.s32.totalorder %s672_s19, 1 }
   0xa   : > { %s1365_s20 = scalar_select %p1132_p1, 1, 0 }
   0xb   : > { %p1142_p4 = por %p1132_p1, %p54_p0  ;;  %p673_p5 = scmp.ge.s32.totalorder %s1062_s17, 1 }
   0xc   : > { %p1147_p6 = por %p133_p3, %p54_p0  ;;  %p140_p7 = scmp.lt.s32.totalorder %s1062_s17, 3 }
   0xd   : > { %s1367_s22 = scalar_select %p1142_p4, 1, 0 }
   0xe   : > { %s1368_s23 = scalar_select %p1147_p6, 1, 0 }
   0xf   : > { %p1152_p8 = pnand %p673_p5, %p140_p7  ;;  %s1064_s25 = smov [#allocation5]  }
  0x10   : > { %s152_s26 = sshll.u32 %s1064_s25, 4  ;;  %s1065_s28 = smov [#allocation7]   ;;  %s1156_s26 = int_to_ptr.vmem [resolvable:$true] %s152_s26 }
  0x11   : > { %p781_p9 = pneg %p1152_p8  ;;  %s168_s29 = sshll.u32 %s1065_s28, 4  ;;  %s1167_s29 = int_to_ptr.vmem [resolvable:$true] %s168_s29 }
  0x12   : > { %s890_s5 = scalar_lea.hbm %s1358_s1, 3072 }
  0x13   : > { %p1163_p11 = pnand %p781_p9, %p1132_p1  ;;  %p891_p12 = scmp.ne.s32.totalorder %s1358_s1, %s890_s5 }
  0x14   : > { %p897_p5 = scmp.lt.u32.totalorder %s890_s5, %s1358_s1 }
  0x15   : > { %p892_p13 = pneg %p1163_p11 }
  0x17   : > { %p893_p0 = pnand %p892_p13, %p891_p12 }
  0x19   : > { %p894_p3 = pneg %p893_p0 }
  0x1b   : > { %p899_p7 = pnand %p897_p5, %p894_p3 }
  0x1d   : > { %902 = shalt.err (!%p899_p7)
}
  0x1e   : > { %s903_s10 = scalar_lea.vmem %s1156_s26, 3072  ;;  %p911_p1 = scmp.lt.s32.totalorder %s1156_s26, %s1156_s26 }
  0x1f   : > { %p904_p9 = scmp.ne.s32.totalorder %s1156_s26, %s903_s10  ;;  %p912_p12 = scmp.lt.s32.totalorder %s903_s10, %s903_s10 }
  0x21   : > { %p906_p10 = pnand %p904_p9, %p892_p13  ;;  %p913_p0 = por %p912_p12, %p911_p1 }
  0x23   : > { %p907_p6 = pneg %p906_p10 }
  0x25   : > { %p914_p4 = pnand %p913_p0, %p907_p6 }
  0x27   : > { %917 = shalt.err (!%p914_p4)
}
  0x28   : > { %s1066_s11 = smov 64   ;;  %s1067_s18 = smov 4  }
  0x29   : > { %784 = dma.hbm_to_vmem [thread:$0]  (!%p1163_p11), %s1358_s1, 3072, %s1156_s26, [#allocation6], %s1066_s11, %s1066_s11, %s1067_s18  }
  0x2a   : > { %s918_s4 = scalar_lea.hbm %s1359_s2, 256 }
  0x2b   : > { %p919_p1 = scmp.ne.s32.totalorder %s1359_s2, %s918_s4  ;;  %p925_p10 = scmp.lt.u32.totalorder %s918_s4, %s1359_s2 }
  0x2d   : > { %p921_p4 = pnand %p919_p1, %p892_p13 }
  0x2f   : > { %p922_p6 = pneg %p921_p4 }
  0x31   : > { %p927_p3 = pnand %p925_p10, %p922_p6 }
  0x33   : > { %930 = shalt.err (!%p927_p3)
}
  0x34   : > { %s931_s26 = scalar_lea.vmem %s1167_s29, 256  ;;  %p939_p12 = scmp.lt.s32.totalorder %s1167_s29, %s1167_s29 }
  0x35   : > { %p932_p5 = scmp.ne.s32.totalorder %s1167_s29, %s931_s26  ;;  %p940_p0 = scmp.lt.s32.totalorder %s931_s26, %s931_s26 }
  0x37   : > { %p934_p7 = pnand %p932_p5, %p892_p13  ;;  %p941_p1 = por %p940_p0, %p939_p12 }
  0x39   : > { %p935_p9 = pneg %p934_p7 }
  0x3b   : > { %p942_p4 = pnand %p941_p1, %p935_p9 }
  0x3d   : > { %945 = shalt.err (!%p942_p4)
}
  0x3e   : > { %s1068_s9 = smov 128   ;;  %s1069_s10 = smov 8  }
  0x3f   : > { %787 = dma.hbm_to_vmem [thread:$0]  (!%p1163_p11), %s1359_s2, 256, %s1167_s29, [#allocation6], %s1068_s9, %s1068_s9, %s1069_s10  }
  0x40   : > { %s32_s19 = sadd.s32 1, %s1058_s16  ;;  %s41_s25 = sadd.s32 1, %s1050_s14 }
  0x41   : > { %p34_p13 = scmp.ge.s32.totalorder %s32_s19, 2  ;;  %p48_p6 = scmp.ne.s32.totalorder %s1050_s14, %s1046_s13 }
  0x42   : > { %p49_p10 = scmp.eq.s32.totalorder %s1062_s17, 0  ;;  %p798_p3 = scmp.lt.s32.totalorder %s1062_s17, 2 }
  0x43   : > { %s1384_s19 = smov (%p34_p13, %s32_s19), 0  ;;  %p1231_p7 = por %p1136_p2, %p48_p6 }
  0x44   : > { %p50_p5 = por %p49_p10, %p48_p6  ;;  %s36_s27 = ssub.s32 %s1058_s16, %s1384_s19 }
  0x45   : > { %s1371_s28 = scalar_select %p1231_p7, 1, 0 }
  0x46   : > { %s182_s30 = sand.u32 1, %s1050_s14   ;;  %p39_p9 = scmp.eq.s32.totalorder %s36_s27, 0 }
  0x47   : > { %s766_s29 = smul.u32 24, %s182_s30  ;;  %p1238_p11 = pnand %p798_p3, %p50_p5 }
  0x48   : > { %s1243_s5 = scalar_select %p39_p9, %s1050_s14, %s41_s25  }
  0x49   : > { %s767_s6 = smul.u32 384, %s1058_s16  ;;  %s186_s7 = scalar_lea.vmem [#allocation2], %s766_s29 }
  0x4a   : > { %s196_s8 = sshll.u32 %s186_s7, 4  ;;  %s1253_s10 = scalar_lea.sflag [#allocation3], %s182_s30  ;;  %s1251_s8 = int_to_ptr.vmem [resolvable:$true] %s196_s8 }
  0x4b   : > { %s1249_s9 = scalar_lea.hbm %s1357_s0, %s767_s6  ;;  %p948_p12 = pneg %p1238_p11 }
  0x4c   : > { %s946_s11 = scalar_lea.hbm %s1249_s9, 384  ;;  %s951_s27 = scalar_lea.hbm %s1357_s0, 768 }
  0x4d   : > { %p947_p2 = scmp.ne.s32.totalorder %s1249_s9, %s946_s11  ;;  %p952_p4 = scmp.lt.u32.totalorder %s1249_s9, %s1357_s0 }
  0x4e   : > { %p953_p13 = scmp.lt.u32.totalorder %s951_s27, %s946_s11  ;;  %p955_p10 = scmp.lt.u32.totalorder %s946_s11, %s1249_s9 }
  0x4f   : > { %p949_p0 = pnand %p948_p12, %p947_p2 }
  0x50   : > { %p954_p6 = por %p953_p13, %p952_p4 }
  0x51   : > { %p950_p1 = pneg %p949_p0 }
  0x52   : > { %p956_p3 = por %p955_p10, %p954_p6 }
  0x54   : > { %p957_p5 = pnand %p956_p3, %p950_p1 }
  0x56   : > { %960 = shalt.err (!%p957_p5)
}
  0x57   : > { %s961_s30 = scalar_lea.vmem %s1251_s8, 384  ;;  %s1070_s7 = smov [#allocation2]  }
  0x58   : > { %p962_p9 = scmp.ne.s32.totalorder %s1251_s8, %s961_s30  ;;  %s966_s21 = sshll.u32 %s1070_s7, 4  ;;  %s967_s21 = int_to_ptr.vmem [resolvable:$false] %s966_s21 }
  0x59   : > { %s968_s26 = scalar_lea.vmem %s967_s21, 768  ;;  %p969_p7 = scmp.lt.s32.totalorder %s1251_s8, %s967_s21 }
  0x5a   : > { %p964_p2 = pnand %p962_p9, %p948_p12  ;;  %p970_p4 = scmp.lt.s32.totalorder %s968_s26, %s961_s30 }
  0x5c   : > { %p965_p0 = pneg %p964_p2  ;;  %p971_p13 = por %p970_p4, %p969_p7 }
  0x5e   : > { %p972_p6 = pnand %p971_p13, %p965_p0 }
  0x60   : > { %975 = shalt.err (!%p972_p6)
}
  0x61   : > { %s1071_s11 = smov 192   ;;  %s1072_s18 = smov 12  }
  0x62   : > { %791 = dma.hbm_to_vmem [thread:$0]  (!%p1238_p11), %s1249_s9, 384, %s1251_s8, %s1253_s10, %s1071_s11, %s1071_s11, %s1072_s18  }
  0x63   : > { %208 = sbr.rel (%p1152_p8) target bundleno = 380 (0x17c), region = 32  ;;  %s1284_s25 = sand.u32 (!%p1152_p8), 1, %s1046_s13  }
  0x64   : > { %s768_s27 = smul.u32 (!%p1152_p8), 24, %s1284_s25  ;;  %s211_s29 = scalar_lea.sflag (!%p1152_p8), [#allocation3], %s1284_s25 }
  0x65   : > { %p1373_p7 = scmp.ne.s32.totalorder (!%p1152_p8), %s1367_s22, 0 }
  0x66   : > { %s1288_s6 = scalar_lea.vmem (!%p1152_p8), [#allocation2], %s768_s27 }
  0x6a   : > { %1029 = dma.done.wait (%p1373_p7), %s211_s29, 384  }
  0x6b   : > { %1031 = vsyncadd (%p1373_p7), %s211_s29, 4294966912  ;;  %p1374_p11 = scmp.ne.s32.totalorder %s1365_s20, 0 }
  0x6d   : > { %1033 = dma.done.wait (%p1374_p11), [#allocation6], 3328  }
  0x6e   : > { %1035 = vsyncadd (%p1374_p11), [#allocation6], 4294963968  ;;  %v1073_v0 = vmov 0.0   ;;  %vm1074_vm0 = vmmov 0   ;;  %v862_v1 = vld [vmem:[#allocation5 + $0x40] sm:$0xff]   ;;  %v865_v4 = vld [vmem:[#allocation5 + $0x48] sm:$0xff]  }
  0x6f   : > { %746 = vmatprep.subr.bf16.mxu1 %v1073_v0  ;;  %762 = vmatprep.mubr.msk.bf16.mxu1 %vm1074_vm0, %v1073_v0  ;;  %v863_v2 = vld [vmem:[#allocation5] sm:$0xff]   ;;  %v866_v5 = vld [vmem:[#allocation5 + $0x8] sm:$0xff]   ;;  %v868_v7 = vld [vmem:[#allocation5 + $0x50] sm:$0xff]   ;;  %s681_s20 = sshll.u32 %s1284_s25, 4  ;;  %s714_s4 = sshll.u32 %s1054_s15, 8 }
  0x70   : > { %715 = vmatprep.subr.bf16.mxu0 %v862_v1  ;;  %v864_v3 = vld [vmem:[#allocation5 + $0x80] sm:$0xff]   ;;  %v867_v6 = vld [vmem:[#allocation5 + $0x88] sm:$0xff]   ;;  %v869_v8 = vld [vmem:[#allocation5 + $0x10] sm:$0xff]   ;;  %s244_s22 = scalar_lea.vmem [#allocation8], %s681_s20  ;;  %s1308_s10 = scalar_lea.hbm %s1360_s3, %s714_s4 }
  0x71   : > { %716 = vmatpush3.bf16.msra.mxu0 %v863_v2  ;;  %747 = vmatpush3.bf16.msra.mxu1 %v864_v3  ;;  %v870_v9 = vld [vmem:[#allocation5 + $0x90] sm:$0xff]   ;;  %v871_v10 = vld [vmem:[#allocation5 + $0x58] sm:$0xff]   ;;  %v874_v13 = vld [vmem:[#allocation5 + $0x60] sm:$0xff]   ;;  %s563_s24 = sshll.u32 %s244_s22, 4  ;;  %s548_s30 = scalar_lea.sflag [#allocation4], %s1284_s25  ;;  %s1303_s24 = int_to_ptr.vmem [resolvable:$true] %s563_s24 }
  0x72   : > { %717 = vmatprep.subr.bf16.mxu0 %v865_v4  ;;  %748 = vmatprep.subr.bf16.mxu1 %v1073_v0  ;;  %v872_v11 = vld [vmem:[#allocation5 + $0x18] sm:$0xff]   ;;  %v875_v14 = vld [vmem:[#allocation5 + $0x20] sm:$0xff]   ;;  %v877_v16 = vld [vmem:[#allocation5 + $0x68] sm:$0xff]   ;;  %s976_s7 = scalar_lea.vmem %s1303_s24, 256  ;;  %p1375_p12 = scmp.ne.s32.totalorder %s1371_s28, 0 }
  0x73   : > { %v873_v12 = vld [vmem:[#allocation5 + $0x98] sm:$0xff]   ;;  %v876_v15 = vld [vmem:[#allocation5 + $0xa0] sm:$0xff]   ;;  %v878_v17 = vld [vmem:[#allocation5 + $0x28] sm:$0xff]   ;;  %p977_p8 = scmp.ne.s32.totalorder %s1303_s24, %s976_s7  ;;  %s1075_s15 = smov [#allocation8]  }
  0x74   : > { %v879_v18 = vld [vmem:[#allocation5 + $0xa8] sm:$0xff]   ;;  %v880_v19 = vld [vmem:[#allocation5 + $0x70] sm:$0xff]   ;;  %v883_v22 = vld [vmem:[#allocation5 + $0x78] sm:$0xff]   ;;  %s980_s21 = sshll.u32 %s1075_s15, 4  ;;  %s981_s21 = int_to_ptr.vmem [resolvable:$false] %s980_s21 }
  0x75   : > { %718 = vmatpush3.bf16.msra.mxu0 %v866_v5  ;;  %749 = vmatpush3.bf16.msra.mxu1 %v867_v6  ;;  %v881_v20 = vld [vmem:[#allocation5 + $0x30] sm:$0xff]   ;;  %v884_v24 = vld [vmem:[#allocation5 + $0x38] sm:$0xff]   ;;  %v301_v30 = vld [vmem:[#allocation7] sm:$0xff]  ;;  %p978_p1 = pnand %p977_p8, %p1375_p12  ;;  %s982_s26 = scalar_lea.vmem %s981_s21, 512 }
  0x76   : > { %719 = vmatprep.subr.bf16.mxu0 %v868_v7  ;;  %750 = vmatprep.subr.bf16.mxu1 %v1073_v0  ;;  %v882_v21 = vld [vmem:[#allocation5 + $0xb0] sm:$0xff]   ;;  %v888_v25 = vld [vmem:[#allocation5 + $0xb8] sm:$0xff]   ;;  %v302_v36 = vld [vmem:[#allocation7 + $0x8] sm:$0xff]  ;;  %p983_p3 = scmp.lt.s32.totalorder %s1303_s24, %s981_s21  ;;  %p984_p5 = scmp.lt.s32.totalorder %s982_s26, %s976_s7 }
  0x77   : > { %v887_v23 = vld [vmem:[%s1288_s6 + $0x4] ss:$12 sps:$4 sm:$0xff]   ;;  %v885_v26 = vld [vmem:[%s1288_s6] ss:$12 sps:$4 sm:$0xff]   ;;  %v889_v27 = vld [vmem:[%s1288_s6 + $0x8] ss:$12 sps:$4 sm:$0xff]   ;;  %p979_p10 = pneg %p978_p1 }
  0x78   : > { %495 = vmatprep.mubr.bf16.mxu0 %v887_v23  ;;  %p985_p9 = por %p984_p5, %p983_p3 }
  0x79   : > { %720 = vmatpush3.bf16.msra.mxu0 %v869_v8  ;;  %751 = vmatpush3.bf16.msra.mxu1 %v870_v9 }
  0x7a   : > { %721 = vmatprep.subr.bf16.mxu0 %v871_v10  ;;  %752 = vmatprep.subr.bf16.mxu1 %v1073_v0  ;;  %p986_p2 = pnand %p985_p9, %p979_p10 }
  0x7d   : > { %722 = vmatpush3.bf16.msra.mxu0 %v872_v11  ;;  %753 = vmatpush3.bf16.msra.mxu1 %v873_v12 }
  0x7e   : > { %723 = vmatprep.subr.bf16.mxu0 %v874_v13  ;;  %754 = vmatprep.subr.bf16.mxu1 %v1073_v0 }
  0x81   : > { %724 = vmatpush3.bf16.msra.mxu0 %v875_v14  ;;  %755 = vmatpush3.bf16.msra.mxu1 %v876_v15 }
  0x82   : > { %725 = vmatprep.subr.bf16.mxu0 %v877_v16  ;;  %756 = vmatprep.subr.bf16.mxu1 %v1073_v0 }
  0x85   : > { %726 = vmatpush3.bf16.msra.mxu0 %v878_v17  ;;  %757 = vmatpush3.bf16.msra.mxu1 %v879_v18 }
  0x86   : > { %727 = vmatprep.subr.bf16.mxu0 %v880_v19  ;;  %758 = vmatprep.subr.bf16.mxu1 %v1073_v0 }
  0x89   : > { %728 = vmatpush3.bf16.msra.mxu0 %v881_v20  ;;  %759 = vmatpush3.bf16.msra.mxu1 %v882_v21 }
  0x8a   : > { %729 = vmatprep.subr.bf16.mxu0 %v883_v22  ;;  %760 = vmatprep.subr.bf16.mxu1 %v1073_v0 }
  0x8d   : > { %730 = vmatpush3.bf16.msra.mxu0 %v884_v24  ;;  %761 = vmatpush3.bf16.msra.mxu1 %v888_v25 }
  0x90   : > { %496 = vmatmul.mubr.bf16.vlgmr.msra.gmra.mrb[0].mxu0 %v885_v26  ;;  %763 = vmatmul.mubr.bf16.vlgmr.msra.gmra.mrb[0].mxu1 %v889_v27 }
 0x163   : > { %v731_v28 = vpop.f32.mrb[0].mxu0  ;;  %v538_v31 = vpop.f32.mrb[0].mxu1 }
 0x164   : > { %v732_v29 = vpop.f32.mrb[1].mxu0  ;;  %v764_v34 = vpop.f32.mrb[1].mxu1 }
 0x165   : > { %v733_v32 = vadd.f32 %v732_v29, %v731_v28  ;;  %v734_v33 = vpop.f32.mrb[2].mxu0  ;;  %v541_v37 = vpop.f32.mrb[2].mxu1 }
 0x166   : > { %v735_v35 = vpop.f32.mrb[3].mxu0  ;;  %v765_v40 = vpop.f32.mrb[3].mxu1 }
 0x167   : > { %v498_v38 = vadd.f32 %v733_v32, %v301_v30  ;;  %v736_v39 = vadd.f32 %v735_v35, %v734_v33 }
 0x169   : > { %v539_v41 = vadd.f32 %v538_v31, %v498_v38  ;;  %v501_v42 = vadd.f32 %v736_v39, %v302_v36 }
 0x16b   : > { %545 = vst [vmem:[%s244_s22] sm:$0xff] %v539_v41  ;;  %v542_v43 = vadd.f32 %v541_v37, %v501_v42 }
 0x16d   : > { %546 = vst [vmem:[%s244_s22 + $0x8] sm:$0xff] %v542_v43 }
 0x16e   : > { %989 = shalt.err (!%p986_p2)
}
 0x16f   : > { %s990_s11 = scalar_lea.hbm %s1308_s10, 256  ;;  %s994_s29 = scalar_lea.hbm %s1360_s3, 512 }
 0x170   : > { %p991_p0 = scmp.ne.s32.totalorder %s1308_s10, %s990_s11  ;;  %p995_p6 = scmp.lt.u32.totalorder %s1308_s10, %s1360_s3 }
 0x171   : > { %p996_p7 = scmp.lt.u32.totalorder %s994_s29, %s990_s11  ;;  %p998_p8 = scmp.lt.u32.totalorder %s990_s11, %s1308_s10 }
 0x172   : > { %p992_p4 = pnand %p991_p0, %p1375_p12 }
 0x173   : > { %p997_p11 = por %p996_p7, %p995_p6 }
 0x174   : > { %p993_p13 = pneg %p992_p4 }
 0x175   : > { %p999_p1 = por %p998_p8, %p997_p11 }
 0x177   : > { %p1000_p10 = pnand %p999_p1, %p993_p13 }
 0x179   : > { %1003 = shalt.err (!%p1000_p10)
}
 0x17a   : > { %s1076_s22 = smov 128   ;;  %s1077_s4 = smov 8  }
 0x17b   : > { %779 = dma.vmem_to_hbm [thread:$0]  (%p1375_p12), %s1303_s24, 256, %s1308_s10, %s548_s30, %s1076_s22, %s1076_s22, %s1077_s4  }
 0x17c PF: > { %s578_s8 = sand.u32 1, %s1042_s12   ;;  %p1376_p3 = scmp.ne.s32.totalorder %s1368_s23, 0 }
 0x17d   : > { %p1377_p5 = scmp.ge.s32.totalorder %s1062_s17, 2  ;;  %s579_s9 = scalar_lea.sflag [#allocation4], %s578_s8 }
 0x17f   : > { %p793_p9 = pnand %p1377_p5, %p1376_p3 }
 0x181   : > { %1037 = dma.done.wait (!%p793_p9), %s579_s9, 256  }
 0x182   : > { %1039 = vsyncadd (!%p793_p9), %s579_s9, 4294967040  ;;  %s20_s17 = sadd.s32 1, %s1062_s17   ;;  %s1378_s12 = smov %s1046_s13 }
 0x183   : > { %p17_p2 = scmp.ge.s32.totalorder %s20_s17, 4   ;;  %s1379_s13 = smov %s1050_s14 }
 0x184   : > { %s1380_s14 = smov %s1243_s5  ;;  %s1381_s15 = smov %s1058_s16 }
 0x185   : > { %s1382_s16 = smov %s1384_s19  ;;  %19 = sbr.rel (!%p17_p2) target bundleno = 7 (0x7), region = 86 }
 0x18c   :  { %584 = vsyncpa [#allocation3], 1 }
 0x18d   :  { %586 = vsyncpa [#allocation3 + $0x1], 1 }
 0x18e   :  { %587 = vsyncpa [#allocation6], 1 }
 0x18f   :  { %588 = vsyncpa [#allocation4], 1 }
 0x190   :  { %590 = vsyncpa [#allocation4 + $0x1], 1 }

</bundles_post_ra>
